<compile_context>
chip_gen: v5e
topology: v5e:2x2
jax: 0.10.0
libtpu: 0.0.40
codegen_flags: <defaults>
</compile_context>

<pallas_src>
import functools

import jax
import jax.numpy as jnp
from jax.experimental import pallas as pl
from jax.experimental.pallas import tpu as pltpu


def _round_up(x, m):
    return ((x + m - 1) // m) * m


def _vmem_capacity_bytes():
    """Physical VMEM of the local TPU; conservative (v7x-sized) fallback."""
    try:
        return int(pltpu.get_tpu_info().vmem_capacity_bytes)
    except Exception:
        return 64 * 1024 * 1024


def _default_tile_n(n, d, b_pad):
    """Widest lane-dense entity tile that comfortably fits in VMEM.

    Budget = 1/4 of physical VMEM for the double-buffered entity tile plus the
    double-buffered output block; this keeps v7x (64 MiB) safe while letting
    v5e / v6e (128 MiB) go wide and amortize per-grid-step overhead.
    """
    budget = _vmem_capacity_bytes() // 4
    per_tile_n = 2 * d * 2 + 2 * b_pad * 4   # bf16 ent rows + f32 out cols, x2 buffers
    t = budget // max(per_tile_n, 1)
    t = max(128, min((int(t) // 128) * 128, 4096))
    return min(t, _round_up(n, 128))          # don't over-tile tiny tables


def _score_kernel(q_ref, ent_ref, out_ref):
    # q_ref   : [B_pad, D]      bf16, resident across the entity grid
    # ent_ref : [tile_n, D]     bf16, streamed tile of the entity table
    # out_ref : [B_pad, tile_n] f32  (lane-dense stores over tile_n)
    #
    # A·Bᵀ expressed directly via dot_general (contract on D of both operands)
    # -> maps straight onto the MXU, no XLU transpose / extra VMEM copy of the
    # streamed entity tile.
    out_ref[...] = jax.lax.dot_general(
        q_ref[...],
        ent_ref[...],
        dimension_numbers=(((1,), (1,)), ((), ())),
        preferred_element_type=jnp.float32,
    ).astype(out_ref.dtype)


@functools.partial(jax.jit, static_argnames=("tile_n",))
def _predict_scores_impl(e1_emb, r_emb, entity_table, *, tile_n):
    B, D = e1_emb.shape
    N, _ = entity_table.shape

    B_pad = _round_up(B, 8)          # sublane alignment for the query / output rows
    N_pad = _round_up(N, tile_n)     # lane-dense multiple-of-tile entity axis

    # Fused query built once per batch (tiny [B, D] op); computed in f32 then
    # cast, so only the dominant streamed operand (the entity table) is bf16.
    q = (e1_emb.astype(jnp.float32) * r_emb.astype(jnp.float32)).astype(jnp.bfloat16)
    if B_pad != B:
        q = jnp.pad(q, ((0, B_pad - B), (0, 0)))

    ent = entity_table.astype(jnp.bfloat16)   # no-op if already bf16
    if N_pad != N:
        ent = jnp.pad(ent, ((0, N_pad - N), (0, 0)))

    grid = (N_pad // tile_n,)

    # Explicit VMEM budget: double-buffered entity tile + output block,
    # resident query block, plus margin.  Capped at 3/4 of physical VMEM so a
    # tile that is comfortable on v5e/v6e never overshoots v7x's 64 MiB.
    needed = (2 * tile_n * D * 2        # bf16 entity tile, double-buffered
              + 2 * B_pad * tile_n * 4  # f32 output block, double-buffered
              + 2 * B_pad * D * 2)      # bf16 query block
    vmem_cap = _vmem_capacity_bytes()
    vmem_limit = int(min(max(2 * needed + (2 << 20), 16 << 20), (vmem_cap * 3) // 4))

    cost = pl.CostEstimate(
        flops=2 * B_pad * N_pad * D,
        transcendentals=0,
        bytes_accessed=N_pad * D * 2 + B_pad * D * 2 + B_pad * N_pad * 4,
    )

    scores = pl.pallas_call(
        _score_kernel,
        out_shape=jax.ShapeDtypeStruct((B_pad, N_pad), jnp.float32),
        grid_spec=pltpu.PrefetchScalarGridSpec(
            num_scalar_prefetch=0,
            grid=grid,
            in_specs=[
                pl.BlockSpec((B_pad, D), lambda j: (0, 0)),    # fused query (resident)
                pl.BlockSpec((tile_n, D), lambda j: (j, 0)),   # entity-table tile
            ],
            out_specs=pl.BlockSpec((B_pad, tile_n), lambda j: (0, j)),
        ),
        compiler_params=pltpu.CompilerParams(
            dimension_semantics=("parallel",),     # independent output tiles
            vmem_limit_bytes=vmem_limit,
        ),
        cost_estimate=cost,
    )(q, ent)

    return scores[:B, :N]


def predict_scores(e1_emb, r_emb, entity_table, *, tile_n=None):
    """Pallas-backed scoring: [B, D] x [B, D] x [N, D] -> [B, N] (f32)."""
    N, D = entity_table.shape
    B = e1_emb.shape[0]
    if tile_n is None:
        tile_n = _default_tile_n(N, D, _round_up(B, 8))
    else:
        tile_n = min(_round_up(tile_n, 128), _round_up(N, 128))
    return _predict_scores_impl(e1_emb, r_emb, entity_table, tile_n=tile_n)


class LFrameworkJax:
    """JAX/Pallas re-implementation of LFramework's forward-pass semantics.

    Only the inference path (forward -> batched predict -> concat) is
    reproduced; the training loop / checkpoint / file-IO machinery is
    host-side glue with no kernel content.
    """
    # TODO(synk): run_train / save_checkpoint / load_checkpoint /
    # export_to_embedding_projector are host-side training-loop & file-IO
    # logic with no Pallas equivalent.

    def __init__(self, num_entities, num_relations, dim, batch_size, key):
        self.batch_size = batch_size
        self.dummy_e = 0
        self.dummy_r = 0
        k_e, k_r = jax.random.split(key)
        # Deterministic synthetic "checkpoint".
        self.entity_embeddings = (
            jax.random.normal(k_e, (num_entities, dim), jnp.float32) * 0.1
        )
        self.relation_embeddings = (
            jax.random.normal(k_r, (num_relations, dim), jnp.float32) * 0.1
        )
        # bf16 copy of the dominant streamed operand: halves HBM traffic and
        # VMEM tile footprint; MXU-native on all generations.
        self.entity_embeddings_bf16 = self.entity_embeddings.astype(jnp.bfloat16)

    def make_full_batch(self, mini_batch, batch_size):
        dummy_example = (self.dummy_e, self.dummy_e, self.dummy_r)
        for _ in range(batch_size - len(mini_batch)):
            mini_batch.append(dummy_example)

    def predict(self, mini_batch):
        # TODO(synk): the embedding gathers could be fused into the kernel via
        # PrefetchScalarGridSpec + pl.Element row blocks; at these batch sizes
        # plain JAX indexing is negligible glue.
        e1 = jnp.asarray([ex[0] for ex in mini_batch], dtype=jnp.int32)
        r = jnp.asarray([ex[2] for ex in mini_batch], dtype=jnp.int32)
        e1_emb = self.entity_embeddings[e1]
        r_emb = self.relation_embeddings[r]
        return predict_scores(e1_emb, r_emb, self.entity_embeddings_bf16)

    def forward(self, examples, verbose=False):
        pred_scores = []
        for example_id in range(0, len(examples), self.batch_size):
            mini_batch = list(examples[example_id:example_id + self.batch_size])
            mini_batch_size = len(mini_batch)
            if len(mini_batch) < self.batch_size:
                self.make_full_batch(mini_batch, self.batch_size)
            pred_score = self.predict(mini_batch)
            pred_scores.append(pred_score[:mini_batch_size])
        return jnp.concatenate(pred_scores, axis=0)


if __name__ == "__main__":
    num_entities = 300      # deliberately not a multiple of 128 -> exercises padding
    num_relations = 16
    dim = 32
    batch_size = 8

    key = jax.random.PRNGKey(0)
    k_model, k_e1, k_e2, k_r = jax.random.split(key, 4)

    fw = LFrameworkJax(num_entities, num_relations, dim, batch_size, k_model)

    # 13 triples -> last mini-batch gets padded with the dummy example, then truncated.
    n_examples = 13
    e1s = jax.random.randint(k_e1, (n_examples,), 0, num_entities)
    e2s = jax.random.randint(k_e2, (n_examples,), 0, num_entities)
    rs = jax.random.randint(k_r, (n_examples,), 0, num_relations)
    examples = [(int(e1s[i]), int(e2s[i]), int(rs[i])) for i in range(n_examples)]

    scores = fw.forward(examples)
    scores = jax.block_until_ready(scores)
    assert scores.shape == (n_examples, num_entities)

    # References.
    e1_idx = jnp.asarray([ex[0] for ex in examples], dtype=jnp.int32)
    r_idx = jnp.asarray([ex[2] for ex in examples], dtype=jnp.int32)
    E, R = fw.entity_embeddings, fw.relation_embeddings

    # bf16-faithful reference (bf16 operands, exact products, f32 accumulate).
    q_bf = (E[e1_idx] * R[r_idx]).astype(jnp.bfloat16).astype(jnp.float32)
    ent_bf = E.astype(jnp.bfloat16).astype(jnp.float32)
    ref_bf16 = jnp.dot(q_bf, ent_bf.T, precision=jax.lax.Precision.HIGHEST)
    assert jnp.allclose(scores, ref_bf16, atol=1e-4, rtol=1e-4)

    # Loose sanity check against the pure-f32 reference.
    ref_f32 = jnp.dot(E[e1_idx] * R[r_idx], E.T,
                      precision=jax.lax.Precision.HIGHEST)
    assert jnp.allclose(scores, ref_f32, atol=2e-3, rtol=5e-2)

    # Multi-tile path (forced tile_n=128 -> grid of 3 entity tiles + padding):
    # must be numerically identical (same per-element accumulation).
    scores_multi = predict_scores(E[e1_idx], R[r_idx], fw.entity_embeddings_bf16,
                                  tile_n=128)
    scores_multi = jax.block_until_ready(scores_multi)
    scores_auto = predict_scores(E[e1_idx], R[r_idx], fw.entity_embeddings_bf16)
    assert jnp.allclose(scores_multi, scores_auto, atol=1e-6, rtol=1e-6)

    print("KERNEL_OK")
</pallas_src>

<mosaic_0001>
module attributes {stable_mosaic.version = 11 : i64} {
  func.func @_score_kernel(%arg0: i32, %arg1: memref<8x32xbf16, #tpu.memory_space<vmem>>, %arg2: memref<384x32xbf16, #tpu.memory_space<vmem>>, %arg3: memref<8x384xf32, #tpu.memory_space<vmem>>) attributes {dimension_semantics = [#tpu.dimension_semantics<parallel>], iteration_bounds = array<i64: 1>, scalar_prefetch = 0 : i64, scratch_operands = 0 : i64, tpu.core_type = #tpu.core_type<tc>, window_params = [{pipeline_mode = #tpu.pipeline_mode<synchronous>, transform_indices = @transform_0, window_bounds = array<i64: 8, 32>}, {transform_indices = @transform_1, window_bounds = array<i64: 384, 32>}, {transform_indices = @transform_2, window_bounds = array<i64: 8, 384>}]} {
    %c0 = arith.constant 0 : index
    %c0_0 = arith.constant 0 : index
    %0 = vector.load %arg1[%c0, %c0_0] : memref<8x32xbf16, #tpu.memory_space<vmem>>, vector<8x32xbf16>
    %c0_1 = arith.constant 0 : index
    %c0_2 = arith.constant 0 : index
    %1 = vector.load %arg2[%c0_1, %c0_2] : memref<384x32xbf16, #tpu.memory_space<vmem>>, vector<384x32xbf16>
    %cst = arith.constant dense<0.000000e+00> : vector<8x384xf32>
    %2 = tpu.matmul %0, %1, %cst {dimension_numbers = #tpu.dot_dimension_numbers<[1], [1], [0], [0], [0, 0, 1, 0], [], []>} : vector<8x32xbf16>, vector<384x32xbf16>, vector<8x384xf32> -> vector<8x384xf32>
    %c0_3 = arith.constant 0 : index
    %c0_4 = arith.constant 0 : index
    %3 = vector.load %arg3[%c0_3, %c0_4] : memref<8x384xf32, #tpu.memory_space<vmem>>, vector<8x384xf32>
    tpu.vector_store %arg3[%c0_3, %c0_4], %2 {strides = array<i32>} : memref<8x384xf32, #tpu.memory_space<vmem>>, vector<8x384xf32>,
    return
  }
  func.func @transform_0(%arg0: i32) -> (i32, i32) {
    %c0_i32 = arith.constant 0 : i32
    %c0_i32_0 = arith.constant 0 : i32
    %c0_i32_1 = arith.constant 0 : i32
    return %c0_i32, %c0_i32_0 : i32, i32
  }
  func.func @transform_1(%arg0: i32) -> (i32, i32) {
    %c0_i32 = arith.constant 0 : i32
    %c0_i32_0 = arith.constant 0 : i32
    return %arg0, %c0_i32 : i32, i32
  }
  func.func @transform_2(%arg0: i32) -> (i32, i32) {
    %c0_i32 = arith.constant 0 : i32
    %c0_i32_0 = arith.constant 0 : i32
    return %c0_i32, %arg0 : i32, i32
  }
}

</mosaic_0001>

<bundles_post_ra>
// kernel: _predict_scores_impl.1
= control target key start
LH: loop header
LB: loop body
LE: loop exit
PB: predicated region body
PF: predicated region fallthrough
CT: control target
= control target key end

     0   :  { %vm181_vm0 = vcmask 261120   ;;  %s586_s0 = inlined_call_operand.vmem [shape: bf16[8,32], index: 0, kind: input, shape index: {}]   ;;  %s587_s1 = inlined_call_operand.vmem [shape: bf16[384,32], index: 1, kind: input, shape index: {}]   ;;  %s588_s2 = inlined_call_operand.hbm [shape: f32[8,384], index: 2, kind: output, shape index: {}]  }
   0x1   :  { %v421_v0 = vld [vmem:[%s587_s1 + $0x38] sm:$0xff]  ;;  %v420_v6 = vld [vmem:[%s587_s1 + $0x30] sm:$0xff] }
   0x2   :  { %v429_v1 = vld [vmem:[%s587_s1 + $0x78] sm:$0xff]  ;;  %v207_v3 = vsel %vm181_vm0, %v421_v0, 0  ;;  %v428_v7 = vld [vmem:[%s587_s1 + $0x70] sm:$0xff] }
   0x3   :  { %v437_v2 = vld [vmem:[%s587_s1 + $0xb8] sm:$0xff]  ;;  %v231_v4 = vsel %vm181_vm0, %v429_v1, 0  ;;  %257 = vmatpush.bf16.xpose.msra.mxu0 %v207_v3  ;;  %v436_v8 = vld [vmem:[%s587_s1 + $0xb0] sm:$0xff] }
   0x4   :  { %v255_v5 = vsel %vm181_vm0, %v437_v2, 0  ;;  %270 = vmatpush.bf16.xpose.msra.mxu1 %v231_v4 }
   0x5   :  { %283 = vmatpush.bf16.xpose.msra.mxu2 %v255_v5 }
   0x6   :  { %7 = vsyncpa [#allocation3], 0  ;;  %v204_v9 = vsel %vm181_vm0, %v420_v6, 0  ;;  %v228_v10 = vsel %vm181_vm0, %v428_v7, 0  ;;  %v252_v11 = vsel %vm181_vm0, %v436_v8, 0  ;;  %v419_v12 = vld [vmem:[%s587_s1 + $0x28] sm:$0xff] }
   0x7   :  { %v427_v13 = vld [vmem:[%s587_s1 + $0x68] sm:$0xff]  ;;  %v201_v15 = vsel %vm181_vm0, %v419_v12, 0  ;;  %v418_v18 = vld [vmem:[%s587_s1 + $0x20] sm:$0xff]  ;;  %v417_v24 = vld [vmem:[%s587_s1 + $0x18] sm:$0xff]  ;;  %s306_s6 = sshll.u32 %s588_s2, 4  ;;  %s307_s6 = int_to_ptr.hbm [resolvable:$true] %s306_s6 }
   0x8   :  { %v435_v14 = vld [vmem:[%s587_s1 + $0xa8] sm:$0xff]  ;;  %v225_v16 = vsel %vm181_vm0, %v427_v13, 0  ;;  %v426_v19 = vld [vmem:[%s587_s1 + $0x60] sm:$0xff]  ;;  %v198_v21 = vsel %vm181_vm0, %v418_v18, 0  ;;  %v425_v25 = vld [vmem:[%s587_s1 + $0x58] sm:$0xff]  ;;  %v195_v27 = vsel %vm181_vm0, %v417_v24, 0 }
   0x9   :  { %v249_v17 = vsel %vm181_vm0, %v435_v14, 0  ;;  %v434_v20 = vld [vmem:[%s587_s1 + $0xa0] sm:$0xff]  ;;  %v222_v22 = vsel %vm181_vm0, %v426_v19, 0  ;;  %v433_v26 = vld [vmem:[%s587_s1 + $0x98] sm:$0xff]  ;;  %v219_v28 = vsel %vm181_vm0, %v425_v25, 0  ;;  %v416_v30 = vld [vmem:[%s587_s1 + $0x10] sm:$0xff] }
   0xa   :  { %v246_v23 = vsel %vm181_vm0, %v434_v20, 0  ;;  %v243_v29 = vsel %vm181_vm0, %v433_v26, 0  ;;  %v424_v31 = vld [vmem:[%s587_s1 + $0x50] sm:$0xff]  ;;  %v192_v33 = vsel %vm181_vm0, %v416_v30, 0  ;;  %v415_v36 = vld [vmem:[%s587_s1 + $0x8] sm:$0xff]  ;;  %v414_v42 = vld [vmem:[%s587_s1] sm:$0xff] }
   0xb   :  { %258 = vmatpush.bf16.xpose.msra.mxu0 %v204_v9  ;;  %v432_v32 = vld [vmem:[%s587_s1 + $0x90] sm:$0xff]  ;;  %v216_v34 = vsel %vm181_vm0, %v424_v31, 0  ;;  %v423_v37 = vld [vmem:[%s587_s1 + $0x48] sm:$0xff]  ;;  %v189_v39 = vsel %vm181_vm0, %v415_v36, 0  ;;  %v422_v43 = vld [vmem:[%s587_s1 + $0x40] sm:$0xff]  ;;  %v186_v45 = vsel %vm181_vm0, %v414_v42, 0 }
   0xc   :  { %271 = vmatpush.bf16.xpose.msra.mxu1 %v228_v10  ;;  %v240_v35 = vsel %vm181_vm0, %v432_v32, 0  ;;  %v431_v38 = vld [vmem:[%s587_s1 + $0x88] sm:$0xff]  ;;  %v213_v40 = vsel %vm181_vm0, %v423_v37, 0  ;;  %v430_v44 = vld [vmem:[%s587_s1 + $0x80] sm:$0xff]  ;;  %v210_v46 = vsel %vm181_vm0, %v422_v43, 0  ;;  %s465_s1 = smov [#allocation2]  }
   0xd   :  { %284 = vmatpush.bf16.xpose.msra.mxu2 %v252_v11  ;;  %v237_v41 = vsel %vm181_vm0, %v431_v38, 0  ;;  %v234_v47 = vsel %vm181_vm0, %v430_v44, 0  ;;  %v12_v48 = vld [vmem:[%s586_s0] sm:$0xf]  ;;  %s304_s3 = sshll.u32 %s465_s1, 4  ;;  %s305_s3 = int_to_ptr.vmem [resolvable:$true] %s304_s3 }
  0x13   :  { %259 = vmatpush.bf16.xpose.msra.mxu0 %v201_v15 }
  0x14   :  { %272 = vmatpush.bf16.xpose.msra.mxu1 %v225_v16 }
  0x15   :  { %285 = vmatpush.bf16.xpose.msra.mxu2 %v249_v17 }
  0x1b   :  { %260 = vmatpush.bf16.xpose.msra.mxu0 %v198_v21 }
  0x1c   :  { %273 = vmatpush.bf16.xpose.msra.mxu1 %v222_v22 }
  0x1d   :  { %286 = vmatpush.bf16.xpose.msra.mxu2 %v246_v23 }
  0x23   :  { %261 = vmatpush.bf16.xpose.msra.mxu0 %v195_v27 }
  0x24   :  { %274 = vmatpush.bf16.xpose.msra.mxu1 %v219_v28 }
  0x25   :  { %287 = vmatpush.bf16.xpose.msra.mxu2 %v243_v29 }
  0x2b   :  { %262 = vmatpush.bf16.xpose.msra.mxu0 %v192_v33 }
  0x2c   :  { %275 = vmatpush.bf16.xpose.msra.mxu1 %v216_v34 }
  0x2d   :  { %288 = vmatpush.bf16.xpose.msra.mxu2 %v240_v35 }
  0x33   :  { %263 = vmatpush.bf16.xpose.msra.mxu0 %v189_v39 }
  0x34   :  { %276 = vmatpush.bf16.xpose.msra.mxu1 %v213_v40 }
  0x35   :  { %289 = vmatpush.bf16.xpose.msra.mxu2 %v237_v41 }
  0x3b   :  { %264 = vmatpush.bf16.xpose.msra.mxu0 %v186_v45 }
  0x3c   :  { %277 = vmatpush.bf16.xpose.msra.mxu1 %v210_v46 }
  0x3d   :  { %290 = vmatpush.bf16.xpose.msra.mxu2 %v234_v47 }
  0x42   :  { %411 = vmatmul.msk.bf16.vlgmr.msra.gmra.mxu0 %vm181_vm0, %v12_v48 }
  0x43   :  { %412 = vmatmul.msk.bf16.vlgmr.msra.gmra.mxu1 %vm181_vm0, %v12_v48 }
  0x44   :  { %413 = vmatmul.msk.bf16.vlgmr.msra.gmra.mxu2 %vm181_vm0, %v12_v48 }
  0xbf   :  { %v266_v49 = vpop.f32.mrf.mxu0 }
  0xc0   :  { %v279_v50 = vpop.f32.mrf.mxu1  ;;  %296 = vst [vmem:[#allocation2] sm:$0xff] %v266_v49 }
  0xc1   :  { %297 = vst [vmem:[#allocation2 + $0x8] sm:$0xff] %v279_v50 }
  0xc7   :  { %v292_v51 = vpop.f32.mrf.mxu2  ;;  %v268_v52 = vpop.f32.mrf.mxu0 }
  0xc8   :  { %298 = vst [vmem:[#allocation2 + $0x10] sm:$0xff] %v292_v51  ;;  %v281_v53 = vpop.f32.mrf.mxu1 }
  0xc9   :  { %309 = dma.vmem_to_hbm [thread:$0]  %s305_s3, 384, %s307_s6, [#allocation3]  }
  0xcf   :  { %v294_v54 = vpop.f32.mrf.mxu2 }
  0xd0   :  { %463 = dma.done.wait [#allocation3], 384  }
  0xd1   :  { %464 = vsyncadd [#allocation3], 4294966912 }
  0xd2   :  { %314 = vsyncpa [#allocation3], 1 }

</bundles_post_ra>
